<compile_context>
chip_gen: v6e
topology: v6e:2x2x1
jax: 0.10.0
libtpu: 0.0.40
codegen_flags: <defaults>
</compile_context>

<pallas_src>
import jax
import jax.numpy as jnp
from jax.experimental import pallas as pl
from jax.experimental.pallas import tpu as pltpu


def convlinear_kernel(x_ref, w_ref, o_ref):
    """Single fused matmul per row tile.

    x_ref : (row_tile, K*C + 1)   unfolded input tap stack + ones column
    w_ref : (K*C + 1, H)          conv taps (+ folded W1) + combined-bias row
    o_ref : (row_tile, H)
    """
    o_ref[...] = jnp.dot(
        x_ref[...], w_ref[...], preferred_element_type=jnp.float32
    ).astype(o_ref.dtype)


def _round_up(a, m):
    return (a + m - 1) // m * m


def conv_linear_forward(x, w1, b1, wc, bc):
    """x: (B, N, C); w1: (H, C); b1: (H,); wc: (H, C, K); bc: (H,) -> (B, N, H)."""
    B, N, C = x.shape
    H, _, K = wc.shape

    # PyTorch 'same' padding: total = K - 1, left = total // 2, right = rest.
    left = (K - 1) // 2
    right = (K - 1) - left

    # ---- glue: im2col + weight fusion (all cheap XLA ops on tiny operands) ----
    # Zero-pad along N and stack the K shifted taps along channels.
    xp = jnp.pad(x, ((0, 0), (left, right), (0, 0)))            # (B, N+K-1, C)
    taps = [xp[:, k:k + N, :] for k in range(K)]                # K x (B, N, C)
    ones = jnp.ones((B, N, 1), x.dtype)                         # bias channel
    xcat = jnp.concatenate(taps + [ones], axis=-1)              # (B, N, K*C+1)

    KCp1 = K * C + 1
    R = B * N
    xrows = xcat.reshape(R, KCp1)

    # Row tiling: 8-aligned tiles, single "parallel" grid axis over B*N rows.
    row_tile = 512 if R >= 512 else _round_up(R, 8)
    Rpad = _round_up(R, row_tile)
    if Rpad != R:
        xrows = jnp.pad(xrows, ((0, Rpad - R), (0, 0)))

    # Combined weight: conv taps transposed to (K, C, H), W1^T folded into the
    # tap that aligns with the unshifted input (tap index == left), and the
    # merged bias (b1 + bc) appended as the last contraction row.
    wct = jnp.transpose(wc, (2, 1, 0))                          # (K, C, H)
    wct = wct.at[left].add(jnp.transpose(w1, (1, 0)))           # fold W1
    w_aug = jnp.concatenate(
        [wct.reshape(K * C, H), (b1 + bc).reshape(1, H)], axis=0
    )                                                           # (K*C+1, H)

    out = pl.pallas_call(
        convlinear_kernel,
        out_shape=jax.ShapeDtypeStruct((Rpad, H), x.dtype),
        grid_spec=pltpu.PrefetchScalarGridSpec(
            num_scalar_prefetch=0,
            grid=(Rpad // row_tile,),
            in_specs=[
                pl.BlockSpec((row_tile, KCp1), lambda i: (i, 0)),
                pl.BlockSpec((KCp1, H), lambda i: (0, 0)),
            ],
            out_specs=pl.BlockSpec((row_tile, H), lambda i: (i, 0)),
        ),
        compiler_params=pltpu.CompilerParams(
            dimension_semantics=("parallel",)),
    )(xrows, w_aug)

    return out[:R].reshape(B, N, H)


def reference_forward(x, w1, b1, wc, bc):
    """Plain-JAX reference matching PyTorch ConvLinear.forward."""
    B, N, C = x.shape
    H, _, K = wc.shape
    left = (K - 1) // 2
    right = (K - 1) - left
    node = jnp.einsum("bnc,hc->bnh", x, w1) + b1
    xp = jnp.pad(x, ((0, 0), (left, right), (0, 0)))
    conv = jnp.zeros((B, N, H), x.dtype)
    for k in range(K):
        conv = conv + jnp.einsum("bnc,hc->bnh", xp[:, k:k + N, :], wc[:, :, k])
    conv = conv + bc
    return node + conv


if __name__ == "__main__":
    # Small shapes consistent with the module docstring "(B, N, 2) --> (B, N, H)".
    B, N = 2, 16
    dim_input_nodes = 2     # C
    dim_emb = 32            # H
    kernel_size = 3         # K (odd, as typical for 'same' conv)

    key = jax.random.PRNGKey(0)
    kx, kw1, kb1, kwc, kbc = jax.random.split(key, 5)

    x = jax.random.normal(kx, (B, N, dim_input_nodes), dtype=jnp.float32)

    # Deterministic synthetic parameters (shapes from the module's __init__).
    w1 = 0.1 * jax.random.normal(kw1, (dim_emb, dim_input_nodes), dtype=jnp.float32)
    b1 = 0.1 * jax.random.normal(kb1, (dim_emb,), dtype=jnp.float32)
    wc = 0.1 * jax.random.normal(kwc, (dim_emb, dim_input_nodes, kernel_size),
                                 dtype=jnp.float32)
    bc = 0.1 * jax.random.normal(kbc, (dim_emb,), dtype=jnp.float32)
    # NOTE: W2 = Linear(dim_emb, dim_emb) exists in __init__ but is unused in forward.

    out = conv_linear_forward(x, w1, b1, wc, bc)
    out = jax.block_until_ready(out)

    ref = reference_forward(x, w1, b1, wc, bc)
    assert out.shape == (B, N, dim_emb)
    assert jnp.allclose(out, ref, atol=1e-5, rtol=1e-5), "mismatch vs reference"

    print("KERNEL_OK")
</pallas_src>

<mosaic_0001>
module attributes {stable_mosaic.version = 11 : i64} {
  func.func @convlinear_kernel(%arg0: i32, %arg1: memref<32x7xf32, #tpu.memory_space<vmem>>, %arg2: memref<7x32xf32, #tpu.memory_space<vmem>>, %arg3: memref<32x32xf32, #tpu.memory_space<vmem>>) attributes {dimension_semantics = [#tpu.dimension_semantics<parallel>], iteration_bounds = array<i64: 1>, scalar_prefetch = 0 : i64, scratch_operands = 0 : i64, tpu.core_type = #tpu.core_type<tc>, window_params = [{transform_indices = @transform_0, window_bounds = array<i64: 32, 7>}, {pipeline_mode = #tpu.pipeline_mode<synchronous>, transform_indices = @transform_1, window_bounds = array<i64: 7, 32>}, {transform_indices = @transform_2, window_bounds = array<i64: 32, 32>}]} {
    %c0 = arith.constant 0 : index
    %c0_0 = arith.constant 0 : index
    %0 = vector.load %arg1[%c0, %c0_0] : memref<32x7xf32, #tpu.memory_space<vmem>>, vector<32x7xf32>
    %c0_1 = arith.constant 0 : index
    %c0_2 = arith.constant 0 : index
    %1 = vector.load %arg2[%c0_1, %c0_2] : memref<7x32xf32, #tpu.memory_space<vmem>>, vector<7x32xf32>
    %cst = arith.constant dense<0.000000e+00> : vector<32x32xf32>
    %2 = tpu.matmul %0, %1, %cst {dimension_numbers = #tpu.dot_dimension_numbers<[1], [0], [0], [1], [0, 0, 1, 1], [], []>} : vector<32x7xf32>, vector<7x32xf32>, vector<32x32xf32> -> vector<32x32xf32>
    %c0_3 = arith.constant 0 : index
    %c0_4 = arith.constant 0 : index
    %3 = vector.load %arg3[%c0_3, %c0_4] : memref<32x32xf32, #tpu.memory_space<vmem>>, vector<32x32xf32>
    tpu.vector_store %arg3[%c0_3, %c0_4], %2 {strides = array<i32>} : memref<32x32xf32, #tpu.memory_space<vmem>>, vector<32x32xf32>,
    return
  }
  func.func @transform_0(%arg0: i32) -> (i32, i32) {
    %c0_i32 = arith.constant 0 : i32
    %c0_i32_0 = arith.constant 0 : i32
    return %arg0, %c0_i32 : i32, i32
  }
  func.func @transform_1(%arg0: i32) -> (i32, i32) {
    %c0_i32 = arith.constant 0 : i32
    %c0_i32_0 = arith.constant 0 : i32
    %c0_i32_1 = arith.constant 0 : i32
    return %c0_i32, %c0_i32_0 : i32, i32
  }
  func.func @transform_2(%arg0: i32) -> (i32, i32) {
    %c0_i32 = arith.constant 0 : i32
    %c0_i32_0 = arith.constant 0 : i32
    return %arg0, %c0_i32 : i32, i32
  }
}

</mosaic_0001>

<bundles_post_ra>
// kernel: tpu_custom_call.1
= control target key start
LH: loop header
LB: loop body
LE: loop exit
PB: predicated region body
PF: predicated region fallthrough
CT: control target
= control target key end

     0   :  { %vm30_vm0 = vcmask 1046528   ;;  %vm17_vm1 = vcmask 56320   ;;  %s221_s0 = inlined_call_operand.vmem [shape: f32[32,7], index: 0, kind: input, shape index: {}]   ;;  %s222_s1 = inlined_call_operand.vmem [shape: f32[7,32], index: 1, kind: input, shape index: {}]   ;;  %s223_s2 = inlined_call_operand.hbm [shape: f32[32,32], index: 2, kind: output, shape index: {}]  }
   0x1   :  { %v16_v0 = vld [vmem:[%s222_s1] sm:$0x7f]  ;;  %v14_v2 = vld [vmem:[%s221_s0 + $0x10] sm:$0xff]  ;;  %v13_v3 = vld [vmem:[%s221_s0 + $0x8] sm:$0xff] }
   0x2   :  { %v12_v1 = vld [vmem:[%s221_s0] sm:$0xff]  ;;  %150 = vmatprep.subr.msk.mxu0 %vm30_vm0, %v16_v0  ;;  %158 = vmatprep.subr.msk.mxu1 %vm30_vm0, %v16_v0  ;;  %v15_v4 = vld [vmem:[%s221_s0 + $0x18] sm:$0xff] }
   0x3   :  { %7 = vsyncpa [#allocation3], 0  ;;  %151 = vmatpush3.msk.msra.mxu0 %vm30_vm0, %v16_v0  ;;  %159 = vmatpush3.msk.msra.mxu1 %vm30_vm0, %v16_v0  ;;  %s185_s1 = smov [#allocation2]   ;;  %vm119_vm2 = vcmask 261120  }
   0x4   :  { %152 = vmatprep.mubr.msk.f32.mxu0 %vm17_vm1, %v12_v1  ;;  %155 = vmatprep.mubr.msk.f32.mxu1 %vm17_vm1, %v14_v2  ;;  %s129_s19 = sshll.u32 %s185_s1, 4  ;;  %s130_s19 = int_to_ptr.vmem [resolvable:$true] %s129_s19 }
   0x5   :  { %153 = vmatmul.mubr.msk.f32.vlgmr.msra.gmra.mxu0 %vm17_vm1, %v13_v3  ;;  %156 = vmatmul.mubr.msk.f32.vlgmr.msra.gmra.mxu1 %vm17_vm1, %v15_v4  ;;  %s163_s0 = scalar_lea.vmem %s130_s19, 512  ;;  %p168_p1 = scmp.lt.s32.totalorder %s130_s19, %s130_s19 }
   0x6   :  { %p164_p0 = scmp.ne.s32.totalorder %s130_s19, %s163_s0  ;;  %p169_p2 = scmp.lt.s32.totalorder %s163_s0, %s163_s0 }
   0x8   :  { %p170_p3 = por %p169_p2, %p168_p1 }
   0xa   :  { %p171_p4 = pnand %p170_p3, %p164_p0 }
  0xc5   :  { %v154_v5 = vpop.f32.mrf.mxu0  ;;  %v157_v6 = vpop.f32.mrf.mxu1 }
  0xc6   :  { %121 = vst.msk [vmem:[#allocation2 + $0x8] sm:$0xff] %vm119_vm2, %v154_v5  ;;  %123 = vst.msk [vmem:[#allocation2 + $0x18] sm:$0xff] %vm119_vm2, %v157_v6 }
  0xc7   :  { %v100_v7 = vpop.f32.mrf.mxu0  ;;  %v110_v8 = vpop.f32.mrf.mxu1 }
  0xc8   :  { %120 = vst.msk [vmem:[#allocation2] sm:$0xff] %vm119_vm2, %v100_v7  ;;  %122 = vst.msk [vmem:[#allocation2 + $0x10] sm:$0xff] %vm119_vm2, %v110_v8 }
  0xc9   :  { %174 = shalt.err (!%p171_p4)
}
  0xca   :  { %s186_s20 = smov 128   ;;  %s187_s21 = smov 8  }
  0xcb   :  { %135 = dma.vmem_to_hbm [thread:$0]  %s130_s19, 512, %s223_s2, [#allocation3], %s186_s20, %s186_s20, %s187_s21  }
  0xcc   :  { %183 = dma.done.wait [#allocation3], 512  }
  0xcd   :  { %184 = vsyncadd [#allocation3], 4294966784 }
  0xce   :  { %139 = vsyncpa [#allocation3], 1 }

</bundles_post_ra>
